<compile_context>
chip_gen: v7x
topology: tpu7x:2x2x1
jax: 0.10.0
libtpu: 0.0.40
codegen_flags: <defaults>
</compile_context>

<pallas_src>
import math

import jax
import jax.numpy as jnp
import numpy as np
from jax.experimental import pallas as pl
from jax.experimental.pallas import tpu as pltpu

KERNEL_SIZE = 11
SIGMA = 1.0


def get_1d_gaussian_kernel(kernel_size: int, sigma: float, muu: float = 0.0):
    # Mirrors GaussianBlur1d.get_1d_gaussian_kernel (torch.linspace from
    # -kernel_size to +kernel_size with kernel_size points).  Computed with
    # numpy at trace time: the taps become compile-time constants.
    x = np.linspace(-kernel_size, kernel_size, kernel_size).astype(np.float32)
    dst = np.sqrt(x ** 2)
    normal = 1.0 / (sigma * math.sqrt(2.0 * np.pi))
    gauss = np.exp(-((dst - muu) ** 2 / (2.0 * sigma ** 2))).astype(np.float32) * normal
    return (gauss / gauss.sum()).astype(np.float32)


def _make_blur_kernel(taps, pad):
    taps = [float(t) for t in taps]

    def kernel(x_ref, o_ref):
        # x_ref / o_ref: (TM, L) tiles; rows are independent (batch*channel),
        # the sequence runs along the lane axis.
        x = x_ref[...].astype(jnp.float32)
        L = x.shape[-1]
        lane = jax.lax.broadcasted_iota(jnp.int32, x.shape, x.ndim - 1)

        acc = taps[pad] * x  # center tap
        for d in range(1, pad + 1):
            w = taps[pad + d]  # == taps[pad - d]  (gaussian is symmetric)
            # out[l] += w * x[l + d]   (zero beyond the right sequence edge)
            plus = pltpu.roll(x, (L - d) % L, axis=x.ndim - 1)
            plus = jnp.where(lane < L - d, plus, 0.0)
            # out[l] += w * x[l - d]   (zero beyond the left sequence edge)
            minus = pltpu.roll(x, d % L, axis=x.ndim - 1)
            minus = jnp.where(lane >= d, minus, 0.0)
            acc = acc + w * (plus + minus)

        o_ref[...] = acc.astype(o_ref.dtype)

    return kernel


def gaussian_blur_1d(x, kernel_size: int = KERNEL_SIZE, sigma: float = SIGMA):
    """x: (bsz, n_mels, seq_len).  Returns same shape/dtype."""
    B, C, L = x.shape
    taps = get_1d_gaussian_kernel(kernel_size, sigma)
    pad = kernel_size // 2

    R = B * C
    x2 = x.reshape(R, L)  # merge leading dims: layout-only, no extra HBM pass

    itemsize = jnp.dtype(x.dtype).itemsize
    sub = 16 if itemsize == 2 else 8  # sublane packing (bf16 packs 16 rows)
    # ~2 MiB per block -> double-buffered in+out ~8 MiB; fits every TPU gen's
    # scoped VMEM while amortizing per-grid-step overhead.
    max_rows = max(sub, ((2 << 20) // max(1, L * itemsize)) // sub * sub)
    tm = R if R <= max_rows else max_rows  # full-dim block or multiple of 8/16
    grid = (pl.cdiv(R, tm),)

    out = pl.pallas_call(
        _make_blur_kernel(taps, pad),
        out_shape=jax.ShapeDtypeStruct((R, L), x.dtype),
        grid=grid,
        in_specs=[pl.BlockSpec((tm, L), lambda i: (i, 0))],
        out_specs=pl.BlockSpec((tm, L), lambda i: (i, 0)),
        compiler_params=pltpu.CompilerParams(
            dimension_semantics=("parallel",),
            vmem_limit_bytes=32 * 1024 * 1024,
        ),
    )(x2)
    return out.reshape(B, C, L)


def _reference(x_np, taps, pad):
    # Depthwise cross-correlation with zero padding, in float64.
    B, C, L = x_np.shape
    xp = np.pad(x_np.astype(np.float64), ((0, 0), (0, 0), (pad, pad)))
    ref = np.zeros((B, C, L), dtype=np.float64)
    for k in range(len(taps)):
        ref += float(taps[k]) * xp[:, :, k:k + L]
    return ref


if __name__ == "__main__":
    key = jax.random.PRNGKey(0)
    taps = get_1d_gaussian_kernel(KERNEL_SIZE, SIGMA)
    pad = KERNEL_SIZE // 2

    # Small shapes consistent with (bsz, n_mels, seq_len).
    for (B, C, L) in [(2, 4, 16), (2, 8, 256)]:
        key, subkey = jax.random.split(key)
        x = jax.random.normal(subkey, (B, C, L), dtype=jnp.float32)
        out = jax.block_until_ready(gaussian_blur_1d(x))
        ref = _reference(np.asarray(x), taps, pad)
        np.testing.assert_allclose(np.asarray(out), ref, rtol=1e-5, atol=1e-5)

    print("KERNEL_OK")
</pallas_src>

<mosaic_0001>
module attributes {stable_mosaic.version = 11 : i64} {
  func.func @kernel(%arg0: i32, %arg1: memref<8x16xf32, #tpu.memory_space<vmem>>, %arg2: memref<8x16xf32, #tpu.memory_space<vmem>>) attributes {dimension_semantics = [#tpu.dimension_semantics<parallel>], iteration_bounds = array<i64: 1>, scalar_prefetch = 0 : i64, scratch_operands = 0 : i64, tpu.core_type = #tpu.core_type<tc>, window_params = [{transform_indices = @transform_0, window_bounds = array<i64: 8, 16>}, {transform_indices = @transform_1, window_bounds = array<i64: 8, 16>}]} {
    %c0 = arith.constant 0 : index
    %c0_0 = arith.constant 0 : index
    %0 = vector.load %arg1[%c0, %c0_0] : memref<8x16xf32, #tpu.memory_space<vmem>>, vector<8x16xf32>
    %1 = tpu.iota {dimensions = array<i32: 1>} : vector<8x16xi32>
    %cst = arith.constant 0.848919272 : f32
    %2 = vector.broadcast %cst : f32 to vector<8x16xf32>
    %3 = arith.mulf %2, %0 : vector<8x16xf32>
    %c15_i32 = arith.constant 15 : i32
    %4 = tpu.dynamic_rotate %0 by %c15_i32 dim 1 : vector<8x16xf32>, i32 -> vector<8x16xf32>
    %c15_i32_1 = arith.constant 15 : i32
    %5 = vector.broadcast %c15_i32_1 : i32 to vector<8x16xi32>
    %6 = arith.cmpi slt, %1, %5 : vector<8x16xi32>
    %cst_2 = arith.constant 0.000000e+00 : f32
    %7 = vector.broadcast %cst_2 : f32 to vector<8x16xf32>
    %8 = arith.select %6, %4, %7 : vector<8x16xi1>, vector<8x16xf32>
    %c1_i32 = arith.constant 1 : i32
    %9 = tpu.dynamic_rotate %0 by %c1_i32 dim 1 : vector<8x16xf32>, i32 -> vector<8x16xf32>
    %c1_i32_3 = arith.constant 1 : i32
    %10 = vector.broadcast %c1_i32_3 : i32 to vector<8x16xi32>
    %11 = arith.cmpi sge, %1, %10 : vector<8x16xi32>
    %cst_4 = arith.constant 0.000000e+00 : f32
    %12 = vector.broadcast %cst_4 : f32 to vector<8x16xf32>
    %13 = arith.select %11, %9, %12 : vector<8x16xi1>, vector<8x16xf32>
    %14 = arith.addf %8, %13 : vector<8x16xf32>
    %cst_5 = arith.constant 0.075487271 : f32
    %15 = vector.broadcast %cst_5 : f32 to vector<8x16xf32>
    %16 = arith.mulf %15, %14 : vector<8x16xf32>
    %17 = arith.addf %3, %16 : vector<8x16xf32>
    %c14_i32 = arith.constant 14 : i32
    %18 = tpu.dynamic_rotate %0 by %c14_i32 dim 1 : vector<8x16xf32>, i32 -> vector<8x16xf32>
    %c14_i32_6 = arith.constant 14 : i32
    %19 = vector.broadcast %c14_i32_6 : i32 to vector<8x16xi32>
    %20 = arith.cmpi slt, %1, %19 : vector<8x16xi32>
    %cst_7 = arith.constant 0.000000e+00 : f32
    %21 = vector.broadcast %cst_7 : f32 to vector<8x16xf32>
    %22 = arith.select %20, %18, %21 : vector<8x16xi1>, vector<8x16xf32>
    %c2_i32 = arith.constant 2 : i32
    %23 = tpu.dynamic_rotate %0 by %c2_i32 dim 1 : vector<8x16xf32>, i32 -> vector<8x16xf32>
    %c2_i32_8 = arith.constant 2 : i32
    %24 = vector.broadcast %c2_i32_8 : i32 to vector<8x16xi32>
    %25 = arith.cmpi sge, %1, %24 : vector<8x16xi32>
    %cst_9 = arith.constant 0.000000e+00 : f32
    %26 = vector.broadcast %cst_9 : f32 to vector<8x16xf32>
    %27 = arith.select %25, %23, %26 : vector<8x16xi1>, vector<8x16xf32>
    %28 = arith.addf %22, %27 : vector<8x16xf32>
    %cst_10 = arith.constant 5.30756915E-5 : f32
    %29 = vector.broadcast %cst_10 : f32 to vector<8x16xf32>
    %30 = arith.mulf %29, %28 : vector<8x16xf32>
    %31 = arith.addf %17, %30 : vector<8x16xf32>
    %c13_i32 = arith.constant 13 : i32
    %32 = tpu.dynamic_rotate %0 by %c13_i32 dim 1 : vector<8x16xf32>, i32 -> vector<8x16xf32>
    %c13_i32_11 = arith.constant 13 : i32
    %33 = vector.broadcast %c13_i32_11 : i32 to vector<8x16xi32>
    %34 = arith.cmpi slt, %1, %33 : vector<8x16xi32>
    %cst_12 = arith.constant 0.000000e+00 : f32
    %35 = vector.broadcast %cst_12 : f32 to vector<8x16xf32>
    %36 = arith.select %34, %32, %35 : vector<8x16xi1>, vector<8x16xf32>
    %c3_i32 = arith.constant 3 : i32
    %37 = tpu.dynamic_rotate %0 by %c3_i32 dim 1 : vector<8x16xf32>, i32 -> vector<8x16xf32>
    %c3_i32_13 = arith.constant 3 : i32
    %38 = vector.broadcast %c3_i32_13 : i32 to vector<8x16xi32>
    %39 = arith.cmpi sge, %1, %38 : vector<8x16xi32>
    %cst_14 = arith.constant 0.000000e+00 : f32
    %40 = vector.broadcast %cst_14 : f32 to vector<8x16xf32>
    %41 = arith.select %39, %37, %40 : vector<8x16xi1>, vector<8x16xf32>
    %42 = arith.addf %36, %41 : vector<8x16xf32>
    %cst_15 = arith.constant 2.95075464E-10 : f32
    %43 = vector.broadcast %cst_15 : f32 to vector<8x16xf32>
    %44 = arith.mulf %43, %42 : vector<8x16xf32>
    %45 = arith.addf %31, %44 : vector<8x16xf32>
    %c12_i32 = arith.constant 12 : i32
    %46 = tpu.dynamic_rotate %0 by %c12_i32 dim 1 : vector<8x16xf32>, i32 -> vector<8x16xf32>
    %c12_i32_16 = arith.constant 12 : i32
    %47 = vector.broadcast %c12_i32_16 : i32 to vector<8x16xi32>
    %48 = arith.cmpi slt, %1, %47 : vector<8x16xi32>
    %cst_17 = arith.constant 0.000000e+00 : f32
    %49 = vector.broadcast %cst_17 : f32 to vector<8x16xf32>
    %50 = arith.select %48, %46, %49 : vector<8x16xi1>, vector<8x16xf32>
    %c4_i32 = arith.constant 4 : i32
    %51 = tpu.dynamic_rotate %0 by %c4_i32 dim 1 : vector<8x16xf32>, i32 -> vector<8x16xf32>
    %c4_i32_18 = arith.constant 4 : i32
    %52 = vector.broadcast %c4_i32_18 : i32 to vector<8x16xi32>
    %53 = arith.cmpi sge, %1, %52 : vector<8x16xi32>
    %cst_19 = arith.constant 0.000000e+00 : f32
    %54 = vector.broadcast %cst_19 : f32 to vector<8x16xf32>
    %55 = arith.select %53, %51, %54 : vector<8x16xi1>, vector<8x16xf32>
    %56 = arith.addf %50, %55 : vector<8x16xf32>
    %cst_20 = arith.constant 1.29713004E-17 : f32
    %57 = vector.broadcast %cst_20 : f32 to vector<8x16xf32>
    %58 = arith.mulf %57, %56 : vector<8x16xf32>
    %59 = arith.addf %45, %58 : vector<8x16xf32>
    %c11_i32 = arith.constant 11 : i32
    %60 = tpu.dynamic_rotate %0 by %c11_i32 dim 1 : vector<8x16xf32>, i32 -> vector<8x16xf32>
    %c11_i32_21 = arith.constant 11 : i32
    %61 = vector.broadcast %c11_i32_21 : i32 to vector<8x16xi32>
    %62 = arith.cmpi slt, %1, %61 : vector<8x16xi32>
    %cst_22 = arith.constant 0.000000e+00 : f32
    %63 = vector.broadcast %cst_22 : f32 to vector<8x16xf32>
    %64 = arith.select %62, %60, %63 : vector<8x16xi1>, vector<8x16xf32>
    %c5_i32 = arith.constant 5 : i32
    %65 = tpu.dynamic_rotate %0 by %c5_i32 dim 1 : vector<8x16xf32>, i32 -> vector<8x16xf32>
    %c5_i32_23 = arith.constant 5 : i32
    %66 = vector.broadcast %c5_i32_23 : i32 to vector<8x16xi32>
    %67 = arith.cmpi sge, %1, %66 : vector<8x16xi32>
    %cst_24 = arith.constant 0.000000e+00 : f32
    %68 = vector.broadcast %cst_24 : f32 to vector<8x16xf32>
    %69 = arith.select %67, %65, %68 : vector<8x16xi1>, vector<8x16xf32>
    %70 = arith.addf %64, %69 : vector<8x16xf32>
    %cst_25 = arith.constant 4.50868867E-27 : f32
    %71 = vector.broadcast %cst_25 : f32 to vector<8x16xf32>
    %72 = arith.mulf %71, %70 : vector<8x16xf32>
    %73 = arith.addf %59, %72 : vector<8x16xf32>
    %c0_26 = arith.constant 0 : index
    %c0_27 = arith.constant 0 : index
    %74 = vector.load %arg2[%c0_26, %c0_27] : memref<8x16xf32, #tpu.memory_space<vmem>>, vector<8x16xf32>
    tpu.vector_store %arg2[%c0_26, %c0_27], %73 {strides = array<i32>} : memref<8x16xf32, #tpu.memory_space<vmem>>, vector<8x16xf32>,
    return
  }
  func.func @transform_0(%arg0: i32) -> (i32, i32) {
    %c0_i32 = arith.constant 0 : i32
    %c0_i32_0 = arith.constant 0 : i32
    return %arg0, %c0_i32 : i32, i32
  }
  func.func @transform_1(%arg0: i32) -> (i32, i32) {
    %c0_i32 = arith.constant 0 : i32
    %c0_i32_0 = arith.constant 0 : i32
    return %arg0, %c0_i32 : i32, i32
  }
}

</mosaic_0001>

<bundles_post_ra>
// kernel: tpu_custom_call.1
= control target key start
LH: loop header
LB: loop body
LE: loop exit
PB: predicated region body
PF: predicated region fallthrough
CT: control target
= control target key end

     0   :  { %6 = vsyncpa [#allocation3], 0  ;;  %s223_s0 = inlined_call_operand.hbm [shape: f32[8,16], index: 0, kind: input, shape index: {}]   ;;  %s224_s1 = inlined_call_operand.hbm [shape: f32[8,16], index: 1, kind: output, shape index: {}]  }
   0x1   :  { %7 = vsyncpa [#allocation4], 0  ;;  %s176_s6 = smov [#allocation2]   ;;  %s128_s10 = scalar_lea.hbm %s223_s0, 128 }
   0x2   :  { %s14_s7 = sshll.u32 %s176_s6, 4  ;;  %p129_p0 = scmp.ne.s32.totalorder %s223_s0, %s128_s10  ;;  %s15_s7 = int_to_ptr.vmem [resolvable:$true] %s14_s7 }
   0x3   :  { %p132_p1 = scmp.lt.u32.totalorder %s128_s10, %s223_s0 }
   0x5   :  { %p134_p2 = pnand %p132_p1, %p129_p0 }
   0x7   :  { %137 = shalt.err (!%p134_p2)
}
   0x8   :  { %s138_s15 = scalar_lea.vmem %s15_s7, 128  ;;  %p143_p4 = scmp.lt.s32.totalorder %s15_s7, %s15_s7 }
   0x9   :  { %p139_p3 = scmp.ne.s32.totalorder %s15_s7, %s138_s15  ;;  %p144_p5 = scmp.lt.s32.totalorder %s138_s15, %s138_s15 }
   0xb   :  { %p145_p6 = por %p144_p5, %p143_p4 }
   0xd   :  { %p146_p7 = pnand %p145_p6, %p139_p3 }
   0xf   :  { %149 = shalt.err (!%p146_p7)
}
  0x10   :  { %17 = dma.hbm_to_vmem [thread:$0]  %s223_s0, 128, %s15_s7, [#allocation3]  }
  0x11   :  { %172 = dma.done.wait [#allocation3], 128  }
  0x12   :  { %173 = vsyncadd [#allocation3], 4294967168  ;;  %v21_v0 = vld [vmem:[#allocation2] sm:$0xff]  ;;  %s177_s18 = smov 16   ;;  %vm25_vm0 = vcmask 1047680   ;;  %s178_s19 = smov 126   ;;  %v22_v5 = vlaneseq }
  0x13   :  { %26 = vrot.lane.b32.xlu0 %v21_v0, %s177_s18  ;;  %s179_s20 = smov 127   ;;  %s180_s21 = smov 125   ;;  %v24_v21 = vmul.f32 0.8489193, %v21_v0  ;;  %vm98_vm11 = vcmask 130048  }
  0x14   :  { %s181_s22 = smov 113   ;;  %s182_s0 = smov 124   ;;  %v23_v8 = vand.u32 127, %v22_v5 }
  0x15   :  { %s183_s23 = smov 114   ;;  %s184_s24 = smov 123  }
  0x16   :  { %s185_s25 = smov 115   ;;  %s186_s26 = smov 116   ;;  %vm38_vm1 = vcmp.ge.s32.totalorder %v23_v8, 1  ;;  %vm32_vm2 = vcmp.lt.s32.totalorder %v23_v8, 15  ;;  %vm51_vm3 = vcmp.ge.s32.totalorder %v23_v8, 2  ;;  %vm46_vm4 = vcmp.lt.s32.totalorder %v23_v8, 14 }
  0x17   :  { %s187_s27 = smov 117   ;;  %vm59_vm5 = vcmp.lt.s32.totalorder %v23_v8, 13  ;;  %vm64_vm6 = vcmp.ge.s32.totalorder %v23_v8, 3  ;;  %vm72_vm7 = vcmp.lt.s32.totalorder %v23_v8, 12  ;;  %vm77_vm8 = vcmp.ge.s32.totalorder %v23_v8, 4  ;;  %s188_s28 = smov [#allocation5]  }
  0x18   :  { %vm85_vm9 = vcmp.lt.s32.totalorder %v23_v8, 11  ;;  %vm90_vm10 = vcmp.ge.s32.totalorder %v23_v8, 5  ;;  %s106_s29 = sshll.u32 %s188_s28, 4  ;;  %s107_s29 = int_to_ptr.vmem [resolvable:$true] %s106_s29 }
  0x19   :  { %s150_s30 = scalar_lea.vmem %s107_s29, 128  ;;  %p155_p9 = scmp.lt.s32.totalorder %s107_s29, %s107_s29 }
  0x1a   :  { %p151_p8 = scmp.ne.s32.totalorder %s107_s29, %s150_s30  ;;  %p156_p10 = scmp.lt.s32.totalorder %s150_s30, %s150_s30 }
  0x1c   :  { %p157_p11 = por %p156_p10, %p155_p9 }
  0x1e   :  { %p158_p12 = pnand %p157_p11, %p151_p8 }
  0x85   :  { %v27_v1 = vpop.permute.xlu0 %26 }
  0x86   :  { %v28_v2 = vsel %vm25_vm0, %v27_v1, %v21_v0 }
  0x87   :  { %29 = vrot.lane.b32.xlu0 %v28_v2, %s177_s18 }
  0xf9   :  { %v30_v3 = vpop.permute.xlu0 %29 }
  0xfa   :  { %v31_v4 = vsel %vm25_vm0, %v30_v3, %v21_v0 }
  0xfb   :  { %47 = vrot.lane.b32.xlu0 %v31_v4, %s178_s19  ;;  %34 = vrot.lane.b32.xlu1 %v31_v4, %s179_s20 }
  0xff   :  { %60 = vrot.lane.b32.xlu0 %v31_v4, %s180_s21  ;;  %39 = vrot.lane.b32.xlu1 %v31_v4, %s181_s22 }
 0x103   :  { %73 = vrot.lane.b32.xlu0 %v31_v4, %s182_s0  ;;  %52 = vrot.lane.b32.xlu1 %v31_v4, %s183_s23 }
 0x107   :  { %86 = vrot.lane.b32.xlu0 %v31_v4, %s184_s24  ;;  %65 = vrot.lane.b32.xlu1 %v31_v4, %s185_s25 }
 0x10b   :  { %78 = vrot.lane.b32.xlu1 %v31_v4, %s186_s26 }
 0x10f   :  { %91 = vrot.lane.b32.xlu1 %v31_v4, %s187_s27 }
 0x16d   :  { %v48_v6 = vpop.permute.xlu0 %47  ;;  %v35_v7 = vpop.permute.xlu1 %34 }
 0x16e   :  { %v37_v13 = vsel %vm32_vm2, %v35_v7, 0.0  ;;  %v50_v16 = vsel %vm46_vm4, %v48_v6, 0.0 }
 0x171   :  { %v40_v9 = vpop.permute.xlu1 %39  ;;  %v61_v10 = vpop.permute.xlu0 %60 }
 0x172   :  { %v42_v11 = vsel %vm38_vm1, %v40_v9, 0.0  ;;  %v63_v20 = vsel %vm59_vm5, %v61_v10, 0.0 }
 0x173   :  { %v43_v15 = vadd.f32 %v42_v11, %v37_v13 }
 0x175   :  { %v53_v12 = vpop.permute.xlu1 %52  ;;  %v74_v17 = vpop.permute.xlu0 %73  ;;  %v44_v23 = vmul.f32 0.07548727, %v43_v15 }
 0x176   :  { %v55_v14 = vsel %vm51_vm3, %v53_v12, 0.0  ;;  %v76_v27 = vsel %vm72_vm7, %v74_v17, 0.0 }
 0x177   :  { %v56_v18 = vadd.f32 %v55_v14, %v50_v16  ;;  %v45_v29 = vadd.f32 %v44_v23, %v24_v21 }
 0x179   :  { %v66_v19 = vpop.permute.xlu1 %65  ;;  %v57_v25 = vmul.f32 5.307569e-05, %v56_v18  ;;  %v87_v30 = vpop.permute.xlu0 %86 }
 0x17a   :  { %v68_v22 = vsel %vm64_vm6, %v66_v19, 0.0  ;;  %v89_v36 = vsel %vm85_vm9, %v87_v30, 0.0 }
 0x17b   :  { %v69_v24 = vadd.f32 %v68_v22, %v63_v20  ;;  %v58_v33 = vadd.f32 %v57_v25, %v45_v29 }
 0x17d   :  { %v79_v26 = vpop.permute.xlu1 %78  ;;  %v70_v31 = vmul.f32 2.9507546e-10, %v69_v24 }
 0x17e   :  { %v81_v28 = vsel %vm77_vm8, %v79_v26, 0.0 }
 0x17f   :  { %v82_v32 = vadd.f32 %v81_v28, %v76_v27  ;;  %v71_v38 = vadd.f32 %v70_v31, %v58_v33 }
 0x181   :  { %v83_v34 = vmul.f32 1.29713004e-17, %v82_v32  ;;  %v92_v35 = vpop.permute.xlu1 %91 }
 0x182   :  { %v94_v37 = vsel %vm90_vm10, %v92_v35, 0.0 }
 0x183   :  { %v95_v39 = vadd.f32 %v94_v37, %v89_v36  ;;  %v84_v40 = vadd.f32 %v83_v34, %v71_v38 }
 0x185   :  { %v96_v41 = vmul.f32 4.5086887e-27, %v95_v39 }
 0x187   :  { %v97_v42 = vadd.f32 %v96_v41, %v84_v40 }
 0x189   :  { %99 = vst.msk [vmem:[#allocation5] sm:$0xff] %vm98_vm11, %v97_v42 }
 0x18a   :  { %161 = shalt.err (!%p158_p12)
}
 0x18b   :  { %s162_s4 = scalar_lea.hbm %s224_s1, 128 }
 0x18c   :  { %p163_p13 = scmp.ne.s32.totalorder %s224_s1, %s162_s4  ;;  %p166_p0 = scmp.lt.u32.totalorder %s162_s4, %s224_s1 }
 0x18e   :  { %p168_p1 = pnand %p166_p0, %p163_p13 }
 0x190   :  { %171 = shalt.err (!%p168_p1)
}
 0x191   :  { %109 = dma.vmem_to_hbm [thread:$0]  %s107_s29, 128, %s224_s1, [#allocation4]  }
 0x192   :  { %174 = dma.done.wait [#allocation4], 128  }
 0x193   :  { %175 = vsyncadd [#allocation4], 4294967168 }
 0x194   :  { %113 = vsyncpa [#allocation3], 1 }
 0x195   :  { %114 = vsyncpa [#allocation4], 1 }

</bundles_post_ra>
